<compile_context>
chip_gen: v6e
topology: v6e:2x2x1
jax: 0.10.0
libtpu: 0.0.40
codegen_flags: <defaults>
</compile_context>

<pallas_src>
import functools

import jax
import jax.numpy as jnp
from jax.experimental import pallas as pl
from jax.experimental.pallas import tpu as pltpu

LANES = 128
SUBLANES = 8                  # f32 native sublane tile (bf16 -> 16, int8/fp8 -> 32)
TARGET_BLOCK_ROWS = 4096      # 4096 x 128 x 4 B = 2 MiB per f32 block
MIN_GRID_STEPS = 8            # megacore balance: >= 8 steps bounds imbalance to 12.5%
SIN_FLOPS_PER_ELEM = 20       # VALU polynomial cost of sin (advisory for XLA sched)


def _sine_kernel(x_ref, o_ref, *, omega0):
    # Widen to f32 (required on v5e; harmless elsewhere), scale + sin, cast back.
    x = x_ref[...].astype(jnp.float32)
    o_ref[...] = jnp.sin(jnp.float32(omega0) * x).astype(o_ref.dtype)


def _native_sublanes(dtype) -> int:
    """Native sublane tile height for a dtype (8 f32, 16 bf16, 32 int8/fp8)."""
    itemsize = jnp.dtype(dtype).itemsize
    return SUBLANES * max(1, 4 // max(1, itemsize))


def _choose_block_rows(rows: int, sub: int) -> int:
    """Block height: dtype-aligned, <= ~2 MiB f32, aiming for >= 8 grid steps."""
    if rows <= sub:
        return rows  # single full-extent block
    by_steps = -(-rows // MIN_GRID_STEPS)          # ceil(rows / MIN_GRID_STEPS)
    by_steps = -(-by_steps // sub) * sub           # round up to native sublane tile
    return max(sub, min(TARGET_BLOCK_ROWS, by_steps))


def _sine_slab(slab: jax.Array, omega0: float) -> jax.Array:
    """Run the kernel on a [rows, 128] slab (rows need not be sublane-aligned)."""
    rows, lanes = slab.shape
    assert lanes == LANES
    sub = _native_sublanes(slab.dtype)
    block_rows = _choose_block_rows(rows, sub)
    grid = (pl.cdiv(rows, block_rows),)  # cdiv: ragged last block is clipped

    n_elems = rows * LANES
    itemsize = jnp.dtype(slab.dtype).itemsize

    return pl.pallas_call(
        functools.partial(_sine_kernel, omega0=float(omega0)),
        out_shape=jax.ShapeDtypeStruct((rows, LANES), slab.dtype),
        grid=grid,
        in_specs=[pl.BlockSpec((block_rows, LANES), lambda i: (i, 0))],
        out_specs=pl.BlockSpec((block_rows, LANES), lambda i: (i, 0)),
        compiler_params=pltpu.CompilerParams(
            dimension_semantics=("parallel",),
        ),
        cost_estimate=pl.CostEstimate(
            flops=SIN_FLOPS_PER_ELEM * n_elems,
            transcendentals=n_elems,
            bytes_accessed=2 * n_elems * itemsize,
        ),
    )(slab)


def sine(x: jax.Array, omega0: float = 90.0) -> jax.Array:
    """Pallas equivalent of torch.sin(omega0 * input). Preserves shape/dtype."""
    orig_shape = x.shape
    n = x.size
    if n == 0:
        return x

    # Fast path: any element count that is a multiple of 128 -> pure reshape
    # (free for contiguous arrays), no pad / slice HBM round trips. Rows need
    # not be sublane-aligned; the grid's clipped last block handles that.
    if n % LANES == 0:
        out = _sine_slab(x.reshape(n // LANES, LANES), omega0)
        return out.reshape(orig_shape)

    # Ragged path (n % 128 != 0): pad the flat tail only up to the next
    # multiple of 128 (not 1024), run the slab kernel, slice the tail back.
    # TODO(synk): fold the <128-element tail into a masked last block to kill
    # the pad/slice passes entirely for truly ragged shapes.
    n_pad = pl.cdiv(n, LANES) * LANES
    flat = jnp.pad(x.reshape(-1), (0, n_pad - n))
    out = _sine_slab(flat.reshape(n_pad // LANES, LANES), omega0)
    return out.reshape(-1)[:n].reshape(orig_shape)


if __name__ == "__main__":
    omega0 = 90.0
    key = jax.random.PRNGKey(0)
    k0, k1, k2, k3 = jax.random.split(key, 4)

    # Main case: (2, 4, 16, 16) f32 — 2048 elements, fast path, 8-step grid.
    x = jax.random.normal(k0, (2, 4, 16, 16), dtype=jnp.float32)
    y = sine(x, omega0)
    jax.block_until_ready(y)
    y_ref = jnp.sin(omega0 * x)
    assert y.shape == x.shape and y.dtype == x.dtype
    assert jnp.allclose(y, y_ref, atol=1e-5, rtol=1e-5)

    # Odd row count, lane-aligned: (5, 128) — now fast path (was ragged before).
    x1 = jax.random.normal(k1, (5, 128), dtype=jnp.float32)
    y1 = sine(x1, omega0)
    jax.block_until_ready(y1)
    assert jnp.allclose(y1, jnp.sin(omega0 * x1), atol=1e-5, rtol=1e-5)

    # Truly ragged: (3, 5, 7) = 105 elements — minimal 128-pad path.
    x2 = jax.random.normal(k2, (3, 5, 7), dtype=jnp.float32)
    y2 = sine(x2, omega0)
    jax.block_until_ready(y2)
    assert jnp.allclose(y2, jnp.sin(omega0 * x2), atol=1e-5, rtol=1e-5)

    # bf16 I/O: exercises dtype-aware (16-row) sublane tiling; kernel computes
    # in f32 internally, so compare against an f32-internal reference.
    x3 = jax.random.normal(k3, (2, 4, 16, 16), dtype=jnp.bfloat16)
    y3 = sine(x3, omega0)
    jax.block_until_ready(y3)
    y3_ref = jnp.sin(jnp.float32(omega0) * x3.astype(jnp.float32)).astype(jnp.bfloat16)
    assert y3.shape == x3.shape and y3.dtype == x3.dtype
    assert jnp.allclose(y3.astype(jnp.float32), y3_ref.astype(jnp.float32),
                        atol=2e-2, rtol=2e-2)

    print("KERNEL_OK")
</pallas_src>

<mosaic_0001>
module attributes {stable_mosaic.version = 11 : i64} {
  func.func @_sine_kernel(%arg0: i32, %arg1: memref<8x128xf32, #tpu.memory_space<vmem>>, %arg2: memref<8x128xf32, #tpu.memory_space<vmem>>) attributes {dimension_semantics = [#tpu.dimension_semantics<parallel>], iteration_bounds = array<i64: 2>, scalar_prefetch = 0 : i64, scratch_operands = 0 : i64, tpu.core_type = #tpu.core_type<tc>, window_params = [{transform_indices = @transform_0, window_bounds = array<i64: 8, 128>}, {transform_indices = @transform_1, window_bounds = array<i64: 8, 128>}]} {
    %c0 = arith.constant 0 : index
    %c0_0 = arith.constant 0 : index
    %0 = vector.load %arg1[%c0, %c0_0] : memref<8x128xf32, #tpu.memory_space<vmem>>, vector<8x128xf32>
    %cst = arith.constant 9.000000e+01 : f32
    %1 = vector.broadcast %cst : f32 to vector<8x128xf32>
    %2 = arith.mulf %1, %0 : vector<8x128xf32>
    %3 = math.sin %2 : vector<8x128xf32>
    %c0_1 = arith.constant 0 : index
    %c0_2 = arith.constant 0 : index
    %4 = vector.load %arg2[%c0_1, %c0_2] : memref<8x128xf32, #tpu.memory_space<vmem>>, vector<8x128xf32>
    tpu.vector_store %arg2[%c0_1, %c0_2], %3 {strides = array<i32>} : memref<8x128xf32, #tpu.memory_space<vmem>>, vector<8x128xf32>,
    return
  }
  func.func @transform_0(%arg0: i32) -> (i32, i32) {
    %c0_i32 = arith.constant 0 : i32
    %c0_i32_0 = arith.constant 0 : i32
    return %arg0, %c0_i32 : i32, i32
  }
  func.func @transform_1(%arg0: i32) -> (i32, i32) {
    %c0_i32 = arith.constant 0 : i32
    %c0_i32_0 = arith.constant 0 : i32
    return %arg0, %c0_i32 : i32, i32
  }
}

</mosaic_0001>

<bundles_post_ra>
// kernel: tpu_custom_call.1
= control target key start
LH: loop header
LB: loop body
LE: loop exit
PB: predicated region body
PF: predicated region fallthrough
CT: control target
= control target key end

     0   :  { %6 = vsyncpa [#allocation3], 0  ;;  %s683_s0 = inlined_call_operand.hbm [shape: f32[16,128], index: 0, kind: input, shape index: {}]   ;;  %s684_s1 = inlined_call_operand.hbm [shape: f32[16,128], index: 1, kind: output, shape index: {}]  }
   0x1   :  { %8 = vsyncpa [#allocation3 + $0x1], 0 }
   0x2   :  { %9 = vsyncpa [#allocation4], 0 }
   0x3   :  { %11 = vsyncpa [#allocation4 + $0x1], 0  ;;  %s511_s6 = smov 0   ;;  %s513_s7 = smov 0  }
   0x4   :  { %s515_s8 = smov 0   ;;  %s517_s9 = smov 0  }
   0x5 LB: > { %s532_s10 = sadd.s32 4294967295, %s491_s9   ;;  %s323_s11 = sadd.s32 4294967294, %s491_s9   ;;  %s491_s9 = sphi %s517_s9, %s701_s9   ;;  %s487_s8 = sphi %s515_s8, %s700_s8   ;;  %s483_s7 = sphi %s513_s7, %s699_s7   ;;  %s479_s6 = sphi %s511_s6, %s698_s6  }
   0x6   : > { %s536_s12 = sadd.s32 1, %s491_s9   ;;  %s24_s13 = sadd.s32 1, %s487_s8 }
   0x7   : > { %s21_s14 = ssub.s32 %s491_s9, %s536_s12  ;;  %p31_p0 = scmp.ne.s32.totalorder %s487_s8, %s483_s7 }
   0x8   : > { %p22_p1 = scmp.eq.s32.totalorder %s21_s14, 0  ;;  %p32_p2 = scmp.eq.s32.totalorder %s491_s9, 0 }
   0x9   : > { %p37_p3 = scmp.ne.s32.totalorder %s483_s7, %s479_s6  ;;  %p38_p4 = scmp.eq.s32.totalorder %s532_s10, 0 }
   0xa   : > { %s548_s15 = scalar_select %p22_p1, %s487_s8, %s24_s13  }
   0xb   : > { %p550_p5 = por %p32_p2, %p31_p0  ;;  %p554_p6 = por %p38_p4, %p37_p3 }
   0xc   : > { %p61_p7 = scmp.eq.s32.totalorder %s532_s10, 1  ;;  %p67_p8 = scmp.eq.s32.totalorder %s323_s11, 1 }
   0xd   : > { %s688_s17 = scalar_select %p554_p6, 1, 0 }
   0xe   : > { %p355_p10 = scmp.lt.s32.totalorder %s491_s9, 2  ;;  %p561_p11 = por %p61_p7, %p31_p0 }
   0xf   : > { %p565_p12 = por %p67_p8, %p37_p3  ;;  %s87_s20 = sand.u32 1, %s487_s8  }
  0x10   : > { %s689_s18 = scalar_select %p561_p11, 1, 0 }
  0x11   : > { %s690_s19 = scalar_select %p565_p12, 1, 0 }
  0x12   : > { %s327_s21 = sshll.u32 %s491_s9, 7  ;;  %s326_s22 = sshll.u32 %s87_s20, 3 }
  0x13   : > { %s574_s25 = scalar_lea.hbm %s683_s0, %s327_s21  ;;  %s91_s26 = scalar_lea.vmem [#allocation2], %s326_s22 }
  0x14   : > { %s98_s27 = sshll.u32 %s91_s26, 4  ;;  %p578_p13 = pnand %p355_p10, %p550_p5  ;;  %s582_s27 = int_to_ptr.vmem [resolvable:$true] %s98_s27 }
  0x15   : > { %s88_s29 = scalar_lea.sflag [#allocation3], %s87_s20  ;;  %s399_s30 = scalar_lea.hbm %s574_s25, 128 }
  0x16   : > { %p400_p2 = scmp.ne.s32.totalorder %s574_s25, %s399_s30  ;;  %p401_p3 = pneg %p578_p13 }
  0x17   : > { %s404_s4 = scalar_lea.hbm %s683_s0, 256  ;;  %p405_p5 = scmp.lt.s32.totalorder %s574_s25, %s683_s0 }
  0x18   : > { %p402_p4 = pnand %p401_p3, %p400_p2  ;;  %p406_p8 = scmp.lt.s32.totalorder %s404_s4, %s399_s30 }
  0x1a   : > { %p403_p7 = pneg %p402_p4  ;;  %p407_p10 = por %p406_p8, %p405_p5 }
  0x1c   : > { %p408_p9 = pnand %p407_p10, %p403_p7 }
  0x1e   : > { %411 = shalt.err (!%p408_p9)
}
  0x1f   : > { %s412_s13 = scalar_lea.vmem %s582_s27, 128  ;;  %s493_s14 = smov [#allocation2]  }
  0x20   : > { %p413_p0 = scmp.ne.s32.totalorder %s582_s27, %s412_s13  ;;  %s417_s16 = sshll.u32 %s493_s14, 4  ;;  %s418_s16 = int_to_ptr.vmem [resolvable:$false] %s417_s16 }
  0x21   : > { %s419_s20 = scalar_lea.vmem %s418_s16, 256  ;;  %p420_p4 = scmp.lt.s32.totalorder %s582_s27, %s418_s16 }
  0x22   : > { %p415_p1 = pnand %p413_p0, %p401_p3  ;;  %p421_p12 = scmp.lt.s32.totalorder %s419_s20, %s412_s13 }
  0x24   : > { %p416_p2 = pneg %p415_p1  ;;  %p422_p11 = por %p421_p12, %p420_p4 }
  0x26   : > { %p423_p6 = pnand %p422_p11, %p416_p2 }
  0x28   : > { %426 = shalt.err (!%p423_p6)
}
  0x29   : > { %350 = dma.hbm_to_vmem [thread:$0]  (!%p578_p13), %s574_s25, 128, %s582_s27, %s88_s29  }
  0x2a   : > { %p692_p9 = scmp.lt.s32.totalorder %s491_s9, 3  ;;  %p693_p7 = scmp.ge.s32.totalorder %s491_s9, 1 }
  0x2c   : > { %p104_p0 = pnand %p693_p7, %p692_p9 }
  0x2d   : > { %s609_s21 = sand.u32 (!%p104_p0), 1, %s483_s7   ;;  %p694_p6 = scmp.ne.s32.totalorder (!%p104_p0), %s688_s17, 0 }
  0x2e   : > { %107 = sbr.rel (%p104_p0) target bundleno = 151 (0x97), region = 24  ;;  %s329_s22 = sshll.u32 (!%p104_p0), %s609_s21, 3 }
  0x2f   : > { %s110_s23 = scalar_lea.sflag (!%p104_p0), [#allocation3], %s609_s21  ;;  %s113_s24 = scalar_lea.vmem (!%p104_p0), [#allocation2], %s329_s22 }
  0x33   : > { %470 = dma.done.wait (%p694_p6), %s110_s23, 128  }
  0x34   : > { %472 = vsyncadd (%p694_p6), %s110_s23, 4294967168  ;;  %v132_v0 = vld [vmem:[%s113_s24] sm:$0xff]  ;;  %v494_v13 = vmov 683565275   ;;  %v495_v15 = vmov 2475754826  }
  0x35   : > { %v619_v1 = vmul.f32 90.0, %v132_v0  ;;  %v496_v17 = vmov 2131351028   ;;  %v497_v19 = vmov 2102212464   ;;  %s131_s17 = scalar_lea.vmem [#allocation5], %s329_s22 }
  0x36   : > { %v498_v21 = vmov 920167782   ;;  %v499_v28 = vmov 1326507024   ;;  %s253_s25 = sshll.u32 %s131_s17, 4  ;;  %s336_s26 = sshll.u32 %s532_s10, 7  ;;  %s643_s25 = int_to_ptr.vmem [resolvable:$true] %s253_s25 }
  0x37   : > { %v137_v2 = vand.u32 2139095040, %v619_v1  ;;  %v134_v4 = vand.u32 2147483647, %v619_v1  ;;  %vm136_vm7 = vcmp.lt.s32.totalorder %v619_v1, 0  ;;  %vm226_vm12 = vweird.f32 %v619_v1  ;;  %s251_s29 = scalar_lea.hbm %s684_s1, %s336_s26  ;;  %s240_s30 = scalar_lea.sflag [#allocation4], %s609_s21 }
  0x38   : > { %s427_s2 = scalar_lea.vmem %s643_s25, 128  ;;  %p695_p12 = scmp.ne.s32.totalorder %s689_s18, 0 }
  0x39   : > { %v138_v3 = vshrl.u32 %v137_v2, 23  ;;  %v141_v7 = vand.u32 8388607, %v134_v4  ;;  %vm135_vm8 = vcmp.le.f32.partialorder %v134_v4, 0.7853982  ;;  %p428_p11 = scmp.ne.s32.totalorder %s643_s25, %s427_s2  ;;  %s500_s10 = smov [#allocation5]  }
  0x3a   : > { %s431_s3 = sshll.u32 %s500_s10, 4  ;;  %s432_s3 = int_to_ptr.vmem [resolvable:$false] %s431_s3 }
  0x3b   : > { %v331_v5 = vadd.s32 4294967169, %v138_v3  ;;  %v142_v10 = vor.u32 8388608, %v141_v7  ;;  %p429_p13 = pnand %p428_p11, %p695_p12  ;;  %s433_s4 = scalar_lea.vmem %s432_s3, 256 }
  0x3c   : > { %p434_p3 = scmp.lt.s32.totalorder %s643_s25, %s432_s3  ;;  %p435_p5 = scmp.lt.s32.totalorder %s433_s4, %s427_s2 }
  0x3d   : > { %v144_v6 = vadd.s32 1, %v331_v5  ;;  %v182_v30 = vshll.u32 %v142_v10, 8  ;;  %p430_p1 = pneg %p429_p13 }
  0x3e   : > { %p436_p8 = por %p435_p5, %p434_p3 }
  0x3f   : > { %vm145_vm0 = vcmp.gt.s32.totalorder %v144_v6, 0 }
  0x40   : > { %v146_v8 = vsel %vm145_vm0, %v144_v6, 0  ;;  %p437_p10 = pnand %p436_p8, %p430_p1 }
  0x41   : > { %v148_v9 = vand.u32 31, %v146_v8  ;;  %v147_v11 = vshrl.u32 %v146_v8, 5 }
  0x43   : > { %v149_v12 = vsub.s32 32, %v148_v9  ;;  %v151_v14 = vshll.u32 %v494_v13, %v148_v9  ;;  %v154_v16 = vshll.u32 %v495_v15, %v148_v9  ;;  %v157_v18 = vshll.u32 %v496_v17, %v148_v9 }
  0x44   : > { %v160_v20 = vshll.u32 %v497_v19, %v148_v9  ;;  %v163_v22 = vshll.u32 %v498_v21, %v148_v9  ;;  %vm166_vm1 = vcmp.lt.s32.totalorder %v147_v11, 1  ;;  %vm169_vm2 = vcmp.lt.s32.totalorder %v147_v11, 4 }
  0x45   : > { %v150_v23 = vshrl.u32 %v494_v13, %v149_v12  ;;  %v152_v24 = vshrl.u32 %v495_v15, %v149_v12  ;;  %v155_v25 = vshrl.u32 %v496_v17, %v149_v12  ;;  %v158_v26 = vshrl.u32 %v497_v19, %v149_v12 }
  0x46   : > { %v161_v27 = vshrl.u32 %v498_v21, %v149_v12  ;;  %v164_v29 = vshrl.u32 %v499_v28, %v149_v12  ;;  %vm167_vm3 = vcmp.lt.s32.totalorder %v147_v11, 2  ;;  %vm168_vm4 = vcmp.lt.s32.totalorder %v147_v11, 3 }
  0x47   : > { %v153_v31 = vor.u32 %v152_v24, %v151_v14  ;;  %v156_v32 = vor.u32 %v155_v25, %v154_v16  ;;  %v159_v33 = vor.u32 %v158_v26, %v157_v18 }
  0x48   : > { %v162_v34 = vor.u32 %v161_v27, %v160_v20  ;;  %v165_v35 = vor.u32 %v164_v29, %v163_v22 }
  0x49   : > { %v170_v36 = vsel %vm166_vm1, %v150_v23, %v153_v31  ;;  %v171_v37 = vsel %vm169_vm2, %v159_v33, 2102212464  ;;  %v174_v38 = vsel %vm166_vm1, %v153_v31, %v156_v32  ;;  %v178_v39 = vsel %vm166_vm1, %v156_v32, %v159_v33 }
  0x4a   : > { %v172_v40 = vsel %vm168_vm4, %v156_v32, %v171_v37  ;;  %v175_v41 = vsel %vm169_vm2, %v162_v34, 920167782  ;;  %v179_v42 = vsel %vm169_vm2, %v165_v35, 1326507024 }
  0x4b   : > { %v176_v43 = vsel %vm168_vm4, %v159_v33, %v175_v41  ;;  %v180_v44 = vsel %vm168_vm4, %v162_v34, %v179_v42  ;;  %v173_v45 = vsel %vm167_vm3, %v170_v36, %v172_v40 }
  0x4c   : > { %v177_v46 = vsel %vm167_vm3, %v174_v38, %v176_v43  ;;  %v181_v47 = vsel %vm167_vm3, %v178_v39, %v180_v44  ;;  %v189_v52 = vmul.u32 %v182_v30, %v173_v45 }
  0x4d   : > { %v625_v48 = vmul.u32.u64.low %v182_v30, %v181_v47  ;;  %v626_v49 = vmul.u32.u64.high %v182_v30, %v181_v47, %v625_v48  ;;  %v628_v50 = vmul.u32.u64.low %v182_v30, %v177_v46  ;;  %v629_v51 = vmul.u32.u64.high %v182_v30, %v177_v46, %v628_v50 }
  0x4f   : > { %vm191_vm5 = vc.u32 %v626_v49, %v628_v50  ;;  %v192_v53 = vadd.s32 1, %v629_v51  ;;  %v190_v0 = vadd.s32 %v628_v50, %v626_v49 }
  0x51   : > { %v193_v54 = vsel %vm191_vm5, %v192_v53, %v629_v51 }
  0x52   : > { %v194_v55 = vadd.s32 %v193_v54, %v189_v52 }
  0x54   : > { %v195_v56 = vadd.s32 536870912, %v194_v55 }
  0x56   : > { %v196_v57 = vshrl.u32 %v195_v56, 30 }
  0x58   : > { %v197_v58 = vshll.u32 %v196_v57, 30  ;;  %v220_v15 = vsub.s32 4, %v196_v57 }
  0x5a   : > { %v198_v59 = vsub.s32 %v194_v55, %v197_v58  ;;  %v221_v18 = vsel %vm136_vm7, %v220_v15, %v196_v57 }
  0x5b   : > { %v223_v20 = vsel %vm135_vm8, 0, %v221_v18 }
  0x5c   : > { %v200_v60 = vsub.s32 0, %v198_v59  ;;  %v227_v21 = vadd.s32 3, %v223_v20 }
  0x5e   : > { %v332_v61 = vmin.u32 %v200_v60, %v198_v59  ;;  %v228_v22 = vand.u32 3, %v227_v21 }
  0x60   : > { %v202_v62 = vclz %v332_v61  ;;  %vm233_vm9 = vcmp.eq.s32.totalorder %v228_v22, 2  ;;  %vm230_vm10 = vcmp.eq.s32.totalorder %v228_v22, 0  ;;  %vm229_vm11 = vcmp.lt.s32.totalorder %v228_v22, 2 }
  0x62   : > { %v333_v63 = vadd.s32 4294967294, %v202_v62 }
  0x64   : > { %vm334_vm6 = vcmp.lt.s32.totalorder %v333_v63, 0 }
  0x65   : > { %v205_v2 = vsel %vm334_vm6, 0, %v333_v63 }
  0x66   : > { %v206_v3 = vsub.s32 32, %v205_v2  ;;  %v207_v5 = vshll.u32 %v198_v59, %v205_v2  ;;  %v210_v6 = vsub.s32 4294967266, %v205_v2 }
  0x68   : > { %v208_v7 = vshrl.u32 %v190_v0, %v206_v3  ;;  %v211_v8 = vadd.s32 127, %v210_v6 }
  0x6a   : > { %v209_v9 = vor.u32 %v208_v7, %v207_v5  ;;  %v212_v10 = vshll.u32 %v211_v8, 23 }
  0x6c   : > { %v213_v11 = vor.u32 4788187, %v212_v10  ;;  %v216_v12 = vcvt.s32.f32 %v209_v9 }
  0x6e   : > { %v214_v13 = vand.u32 2147483647, %v213_v11 }
  0x70   : > { %v217_v14 = vmul.f32 %v216_v12, %v214_v13 }
  0x72   : > { %v218_v16 = vxor.u32 2147483648, %v217_v14 }
  0x74   : > { %v219_v17 = vsel %vm136_vm7, %v218_v16, %v217_v14 }
  0x75   : > { %v222_v19 = vsel %vm135_vm8, %v619_v1, %v219_v17 }
  0x76   : > { %395 = vcosq.f32 %v222_v19 }
  0x77   : > { %397 = vsinq.f32 %v222_v19 }
  0x83   : > { %v396_v23 = vpop.eup %395 }
  0x84   : > { %v398_v24 = vpop.eup %397  ;;  %v234_v25 = vxor.u32 2147483648, %v396_v23 }
  0x85   : > { %v231_v4 = vxor.u32 2147483648, %v398_v24 }
  0x86   : > { %v235_v26 = vsel %vm233_vm9, %v234_v25, %v398_v24 }
  0x87   : > { %v232_v27 = vsel %vm230_vm10, %v396_v23, %v231_v4 }
  0x88   : > { %v236_v28 = vsel %vm229_vm11, %v232_v27, %v235_v26 }
  0x89   : > { %v237_v29 = vsel %vm226_vm12, nan, %v236_v28 }
  0x8a   : > { %238 = vst [vmem:[%s131_s17] sm:$0xff] %v237_v29 }
  0x8b   : > { %440 = shalt.err (!%p437_p10)
}
  0x8c   : > { %s441_s5 = scalar_lea.hbm %s251_s29, 128  ;;  %s445_s14 = scalar_lea.hbm %s684_s1, 256 }
  0x8d   : > { %p442_p2 = scmp.ne.s32.totalorder %s251_s29, %s441_s5  ;;  %p446_p7 = scmp.lt.s32.totalorder %s251_s29, %s684_s1 }
  0x8e   : > { %p447_p0 = scmp.lt.s32.totalorder %s445_s14, %s441_s5 }
  0x8f   : > { %p443_p4 = pnand %p442_p2, %p695_p12 }
  0x90   : > { %p448_p6 = por %p447_p0, %p446_p7 }
  0x91   : > { %p444_p9 = pneg %p443_p4 }
  0x93   : > { %p449_p11 = pnand %p448_p6, %p444_p9 }
  0x95   : > { %452 = shalt.err (!%p449_p11)
}
  0x96   : > { %345 = dma.vmem_to_hbm [thread:$0]  (%p695_p12), %s643_s25, 128, %s251_s29, %s240_s30  }
  0x97 PF: > { %s265_s21 = sand.u32 1, %s479_s6   ;;  %p696_p13 = scmp.ne.s32.totalorder %s690_s19, 0 }
  0x98   : > { %p697_p1 = scmp.ge.s32.totalorder %s491_s9, 2  ;;  %s266_s22 = scalar_lea.sflag [#allocation4], %s265_s21 }
  0x9a   : > { %p352_p3 = pnand %p697_p1, %p696_p13 }
  0x9c   : > { %p353_p5 = pneg %p352_p3 }
  0x9e   : > { %474 = dma.done.wait (%p353_p5), %s266_s22, 128  }
  0x9f   : > { %476 = vsyncadd (%p353_p5), %s266_s22, 4294967168  ;;  %p14_p8 = scmp.ge.s32.totalorder %s536_s12, 4   ;;  %s698_s6 = smov %s483_s7 }
  0xa0   : > { %s699_s7 = smov %s487_s8  ;;  %s700_s8 = smov %s548_s15 }
  0xa1   : > { %s701_s9 = smov %s536_s12  ;;  %16 = sbr.rel (!%p14_p8) target bundleno = 5 (0x5), region = 69 }
  0xa6   :  { %271 = vsyncpa [#allocation3], 1 }
  0xa7   :  { %273 = vsyncpa [#allocation3 + $0x1], 1 }
  0xa8   :  { %274 = vsyncpa [#allocation4], 1 }
  0xa9   :  { %276 = vsyncpa [#allocation4 + $0x1], 1 }

</bundles_post_ra>
